<compile_context>
chip_gen: v6e
topology: v6e:2x2x1
jax: 0.10.0
libtpu: 0.0.40
codegen_flags: <defaults>
</compile_context>

<pallas_src>
import math

import jax
import jax.numpy as jnp
from jax import lax
from jax.experimental import pallas as pl
from jax.experimental.pallas import tpu as pltpu

_INV_SQRT2 = 1.0 / math.sqrt(2.0)


def _gelu_exact(h):
    # torch.nn.GELU() default (erf form). The tanh approximation would move work
    # to the otherwise-idle EUP slot, but this kernel is HBM-bound at small C,
    # so we keep exact torch numerics.
    return 0.5 * h * (1.0 + lax.erf(h * _INV_SQRT2))


def ffn_kernel_resident(x_ref, w1_ref, b1_ref, w2_ref, b2_ref, o_ref):
    """Both weights fully resident in VMEM; one row block per grid step."""
    x = x_ref[...].astype(jnp.bfloat16)                       # no-op if already bf16
    h = jnp.dot(x, w1_ref[...], preferred_element_type=jnp.float32) + b1_ref[...]
    h = _gelu_exact(h)                                        # f32 epilogue (v5e-safe)
    y = jnp.dot(h.astype(jnp.bfloat16), w2_ref[...],
                preferred_element_type=jnp.float32) + b2_ref[...]
    o_ref[...] = y.astype(o_ref.dtype)
    # TODO(synk): nn.Dropout(config.dropout) is identity in eval mode; a training
    # version needs pltpu.prng_seed / pltpu.prng_random_bits and is intentionally
    # not implemented here.


def ffn_kernel_htiled(x_ref, w1_ref, b1_ref, w2_ref, b2_ref, o_ref, acc_ref):
    """Fallback: hidden dim (4C) tiled; f32 VMEM accumulator over hidden blocks."""
    j = pl.program_id(1)

    @pl.when(j == 0)
    def _():
        acc_ref[...] = jnp.zeros_like(acc_ref)

    x = x_ref[...].astype(jnp.bfloat16)
    h = jnp.dot(x, w1_ref[...], preferred_element_type=jnp.float32) + b1_ref[...]
    h = _gelu_exact(h)
    acc_ref[...] += jnp.dot(h.astype(jnp.bfloat16), w2_ref[...],
                            preferred_element_type=jnp.float32)

    @pl.when(j == pl.num_programs(1) - 1)
    def _():
        o_ref[...] = (acc_ref[...] + b2_ref[...]).astype(o_ref.dtype)


def _round_up(a, b):
    return -(-a // b) * b


def _choose_bm(M, block_m):
    if M <= 8:
        return M                      # single tiny block (== full dim, allowed)
    if M <= block_m:
        # Split into >= 2 row blocks so both v7x TensorCores get work.
        return min(block_m, max(8, _round_up(pl.cdiv(M, 2), 8)))
    return block_m


def feedforward_forward(x, w1, b1, w2, b2, *, block_m=1024, block_h=512,
                        weight_budget_bytes=24 << 20):
    """x: (B, T, C), bf16 preferred (output dtype follows x).
    w1: (C, 4C) bf16, b1: (1, 4C) f32, w2: (4C, C) bf16, b2: (1, C) f32
    (weights are pre-transposed vs torch.nn.Linear so the kernel does x @ W + b)."""
    B, T, C = x.shape
    H = w1.shape[1]
    M = B * T
    x2 = x.reshape(M, C)
    out_dtype = x.dtype

    bm = _choose_bm(M, block_m)
    m_blocks = pl.cdiv(M, bm)

    xb = jnp.dtype(x.dtype).itemsize
    ob = jnp.dtype(out_dtype).itemsize
    wb = jnp.dtype(w1.dtype).itemsize

    # Double-buffered resident weights + biases.
    resident_weight_bytes = 2 * (2 * C * H * wb + (H + C) * 4)
    use_resident = (resident_weight_bytes <= weight_budget_bytes) or (H % 128 != 0)

    if use_resident:
        est = (2 * bm * C * (xb + ob)              # pipelined x / out blocks
               + resident_weight_bytes             # weights + biases (2x buffered)
               + bm * H * (4 + 2) + bm * C * 4)    # h f32 + h bf16 + y f32 temps
        vmem_limit = int(min(100 << 20, max(32 << 20, est * 3 // 2)))
        out = pl.pallas_call(
            ffn_kernel_resident,
            out_shape=jax.ShapeDtypeStruct((M, C), out_dtype),
            grid_spec=pltpu.PrefetchScalarGridSpec(
                num_scalar_prefetch=0,
                grid=(m_blocks,),
                in_specs=[
                    pl.BlockSpec((bm, C), lambda i: (i, 0)),   # activation rows
                    pl.BlockSpec((C, H), lambda i: (0, 0)),    # w1 (resident)
                    pl.BlockSpec((1, H), lambda i: (0, 0)),    # b1
                    pl.BlockSpec((H, C), lambda i: (0, 0)),    # w2 (resident)
                    pl.BlockSpec((1, C), lambda i: (0, 0)),    # b2
                ],
                out_specs=pl.BlockSpec((bm, C), lambda i: (i, 0)),
            ),
            compiler_params=pltpu.CompilerParams(
                dimension_semantics=("parallel",),
                vmem_limit_bytes=vmem_limit,
            ),
        )(x2, w1, b1, w2, b2)
    else:
        # Hidden-dim tiled fallback (weights too big for VMEM residency).
        th = min(_round_up(block_h, 128), H)
        while H % th:                   # th must divide H exactly (no masked K-garbage)
            th -= 128
        h_blocks = H // th
        est = (2 * bm * C * (xb + ob)
               + 2 * (2 * C * th * wb + th * 4) + 2 * C * 4   # weight/bias blocks
               + bm * th * (4 + 2) + 2 * bm * C * 4)          # temps + accumulator
        vmem_limit = int(min(100 << 20, max(32 << 20, est * 3 // 2)))
        out = pl.pallas_call(
            ffn_kernel_htiled,
            out_shape=jax.ShapeDtypeStruct((M, C), out_dtype),
            grid_spec=pltpu.PrefetchScalarGridSpec(
                num_scalar_prefetch=0,
                grid=(m_blocks, h_blocks),
                in_specs=[
                    pl.BlockSpec((bm, C), lambda i, j: (i, 0)),
                    pl.BlockSpec((C, th), lambda i, j: (0, j)),
                    pl.BlockSpec((1, th), lambda i, j: (0, j)),
                    pl.BlockSpec((th, C), lambda i, j: (j, 0)),
                    pl.BlockSpec((1, C), lambda i, j: (0, 0)),
                ],
                out_specs=pl.BlockSpec((bm, C), lambda i, j: (i, 0)),
                scratch_shapes=[pltpu.VMEM((bm, C), jnp.float32)],
            ),
            compiler_params=pltpu.CompilerParams(
                dimension_semantics=("parallel", "arbitrary"),
                vmem_limit_bytes=vmem_limit,
            ),
        )(x2, w1, b1, w2, b2)

    return out.reshape(B, T, C)


# ----------------------------- references ----------------------------------

def feedforward_reference_bf16(x, w1, b1, w2, b2):
    """Same math as the kernel (bf16 matmul operands, f32 accumulate), f32 out."""
    h = jnp.dot(x.astype(jnp.bfloat16), w1,
                preferred_element_type=jnp.float32) + b1
    h = 0.5 * h * (1.0 + lax.erf(h * _INV_SQRT2))
    y = jnp.dot(h.astype(jnp.bfloat16), w2,
                preferred_element_type=jnp.float32) + b2
    return y


def feedforward_reference_f32(x, w1, b1, w2, b2):
    """Full-f32 reference (torch-equivalent numerics, modulo bf16 storage)."""
    xf = x.astype(jnp.float32)
    h = xf @ w1.astype(jnp.float32) + b1
    h = 0.5 * h * (1.0 + lax.erf(h * _INV_SQRT2))
    return h @ w2.astype(jnp.float32) + b2


def init_params(key, n_embed):
    C = n_embed
    H = 4 * C
    std = 0.02
    k1, k2, k3, k4 = jax.random.split(key, 4)
    # Pre-transposed vs torch.nn.Linear (kernel computes y = x @ W + b).
    w1 = (std * jax.random.normal(k1, (C, H), jnp.float32)).astype(jnp.bfloat16)
    b1 = std * jax.random.normal(k2, (1, H), jnp.float32)
    w2 = (std * jax.random.normal(k3, (H, C), jnp.float32)).astype(jnp.bfloat16)
    b2 = std * jax.random.normal(k4, (1, C), jnp.float32)
    return w1, b1, w2, b2


if __name__ == "__main__":
    key = jax.random.PRNGKey(0)

    # --- Test 1: resident-weight path (config.n_embed=32 -> hidden 128) ------
    B, T, C = 2, 8, 32
    kx, kp, key = jax.random.split(key, 3)
    x = jax.random.normal(kx, (B, T, C), jnp.float32).astype(jnp.bfloat16)
    w1, b1, w2, b2 = init_params(kp, C)

    out = feedforward_forward(x, w1, b1, w2, b2)
    out = jax.block_until_ready(out)
    assert out.shape == (B, T, C) and out.dtype == x.dtype

    out_f32 = out.reshape(B * T, C).astype(jnp.float32)
    ref_bf16 = feedforward_reference_bf16(x.reshape(B * T, C), w1, b1, w2, b2)
    assert jnp.allclose(out_f32, ref_bf16, atol=1e-2, rtol=1e-2), \
        "resident path: mismatch vs bf16-matmul reference"
    ref_f32 = feedforward_reference_f32(x.reshape(B * T, C), w1, b1, w2, b2)
    assert jnp.allclose(out_f32, ref_f32, atol=3e-2, rtol=3e-2), \
        "resident path: mismatch vs f32 reference"

    # --- Test 2: hidden-dim-tiled fallback path (forced), C=128 / H=512 ------
    B2, T2, C2 = 2, 32, 128
    kx2, kp2, key = jax.random.split(key, 3)
    x2 = jax.random.normal(kx2, (B2, T2, C2), jnp.float32).astype(jnp.bfloat16)
    params2 = init_params(kp2, C2)

    out2 = feedforward_forward(x2, *params2, block_h=128, weight_budget_bytes=0)
    out2 = jax.block_until_ready(out2)
    assert out2.shape == (B2, T2, C2) and out2.dtype == x2.dtype

    out2_f32 = out2.reshape(B2 * T2, C2).astype(jnp.float32)
    ref2 = feedforward_reference_bf16(x2.reshape(B2 * T2, C2), *params2)
    assert jnp.allclose(out2_f32, ref2, atol=1e-2, rtol=1e-2), \
        "tiled path: mismatch vs bf16-matmul reference"

    print("KERNEL_OK")
</pallas_src>

<mosaic_0001>
module attributes {stable_mosaic.version = 11 : i64} {
  func.func @ffn_kernel_resident(%arg0: i32, %arg1: memref<8x32xbf16, #tpu.memory_space<vmem>>, %arg2: memref<32x128xbf16, #tpu.memory_space<vmem>>, %arg3: memref<1x128xf32, #tpu.memory_space<vmem>>, %arg4: memref<128x32xbf16, #tpu.memory_space<vmem>>, %arg5: memref<1x32xf32, #tpu.memory_space<vmem>>, %arg6: memref<8x32xbf16, #tpu.memory_space<vmem>>) attributes {dimension_semantics = [#tpu.dimension_semantics<parallel>], iteration_bounds = array<i64: 2>, scalar_prefetch = 0 : i64, scratch_operands = 0 : i64, tpu.core_type = #tpu.core_type<tc>, window_params = [{transform_indices = @transform_0, window_bounds = array<i64: 8, 32>}, {pipeline_mode = #tpu.pipeline_mode<synchronous>, transform_indices = @transform_1, window_bounds = array<i64: 32, 128>}, {pipeline_mode = #tpu.pipeline_mode<synchronous>, transform_indices = @transform_2, window_bounds = array<i64: 1, 128>}, {pipeline_mode = #tpu.pipeline_mode<synchronous>, transform_indices = @transform_3, window_bounds = array<i64: 128, 32>}, {pipeline_mode = #tpu.pipeline_mode<synchronous>, transform_indices = @transform_4, window_bounds = array<i64: 1, 32>}, {transform_indices = @transform_5, window_bounds = array<i64: 8, 32>}]} {
    %c0 = arith.constant 0 : index
    %c0_0 = arith.constant 0 : index
    %0 = vector.load %arg1[%c0, %c0_0] : memref<8x32xbf16, #tpu.memory_space<vmem>>, vector<8x32xbf16>
    %c0_1 = arith.constant 0 : index
    %c0_2 = arith.constant 0 : index
    %1 = vector.load %arg2[%c0_1, %c0_2] : memref<32x128xbf16, #tpu.memory_space<vmem>>, vector<32x128xbf16>
    %cst = arith.constant dense<0.000000e+00> : vector<8x128xf32>
    %2 = tpu.matmul %0, %1, %cst {dimension_numbers = #tpu.dot_dimension_numbers<[1], [0], [0], [1], [0, 0, 1, 1], [], []>} : vector<8x32xbf16>, vector<32x128xbf16>, vector<8x128xf32> -> vector<8x128xf32>
    %c0_3 = arith.constant 0 : index
    %c0_4 = arith.constant 0 : index
    %3 = vector.load %arg3[%c0_3, %c0_4] : memref<1x128xf32, #tpu.memory_space<vmem>>, vector<1x128xf32>
    %4 = vector.broadcast %3 : vector<1x128xf32> to vector<8x128xf32>
    %5 = arith.addf %2, %4 : vector<8x128xf32>
    %cst_5 = arith.constant 5.000000e-01 : f32
    %6 = vector.broadcast %cst_5 : f32 to vector<8x128xf32>
    %7 = arith.mulf %6, %5 : vector<8x128xf32>
    %cst_6 = arith.constant 0.707106769 : f32
    %8 = vector.broadcast %cst_6 : f32 to vector<8x128xf32>
    %9 = arith.mulf %5, %8 : vector<8x128xf32>
    %10 = math.erf %9 : vector<8x128xf32>
    %cst_7 = arith.constant 1.000000e+00 : f32
    %11 = vector.broadcast %cst_7 : f32 to vector<8x128xf32>
    %12 = arith.addf %11, %10 : vector<8x128xf32>
    %13 = arith.mulf %7, %12 : vector<8x128xf32>
    %14 = arith.truncf %13 : vector<8x128xf32> to vector<8x128xbf16>
    %c0_8 = arith.constant 0 : index
    %c0_9 = arith.constant 0 : index
    %15 = vector.load %arg4[%c0_8, %c0_9] : memref<128x32xbf16, #tpu.memory_space<vmem>>, vector<128x32xbf16>
    %cst_10 = arith.constant dense<0.000000e+00> : vector<8x32xf32>
    %16 = tpu.matmul %14, %15, %cst_10 {dimension_numbers = #tpu.dot_dimension_numbers<[1], [0], [0], [1], [0, 0, 1, 1], [], []>} : vector<8x128xbf16>, vector<128x32xbf16>, vector<8x32xf32> -> vector<8x32xf32>
    %c0_11 = arith.constant 0 : index
    %c0_12 = arith.constant 0 : index
    %17 = vector.load %arg5[%c0_11, %c0_12] : memref<1x32xf32, #tpu.memory_space<vmem>>, vector<1x32xf32>
    %18 = vector.broadcast %17 : vector<1x32xf32> to vector<8x32xf32>
    %19 = arith.addf %16, %18 : vector<8x32xf32>
    %20 = arith.truncf %19 : vector<8x32xf32> to vector<8x32xbf16>
    %c0_13 = arith.constant 0 : index
    %c0_14 = arith.constant 0 : index
    %21 = vector.load %arg6[%c0_13, %c0_14] : memref<8x32xbf16, #tpu.memory_space<vmem>>, vector<8x32xbf16>
    tpu.vector_store %arg6[%c0_13, %c0_14], %20 {strides = array<i32>} : memref<8x32xbf16, #tpu.memory_space<vmem>>, vector<8x32xbf16>,
    return
  }
  func.func @transform_0(%arg0: i32) -> (i32, i32) {
    %c0_i32 = arith.constant 0 : i32
    %c0_i32_0 = arith.constant 0 : i32
    return %arg0, %c0_i32 : i32, i32
  }
  func.func @transform_1(%arg0: i32) -> (i32, i32) {
    %c0_i32 = arith.constant 0 : i32
    %c0_i32_0 = arith.constant 0 : i32
    %c0_i32_1 = arith.constant 0 : i32
    return %c0_i32, %c0_i32_0 : i32, i32
  }
  func.func @transform_2(%arg0: i32) -> (i32, i32) {
    %c0_i32 = arith.constant 0 : i32
    %c0_i32_0 = arith.constant 0 : i32
    %c0_i32_1 = arith.constant 0 : i32
    return %c0_i32, %c0_i32_0 : i32, i32
  }
  func.func @transform_3(%arg0: i32) -> (i32, i32) {
    %c0_i32 = arith.constant 0 : i32
    %c0_i32_0 = arith.constant 0 : i32
    %c0_i32_1 = arith.constant 0 : i32
    return %c0_i32, %c0_i32_0 : i32, i32
  }
  func.func @transform_4(%arg0: i32) -> (i32, i32) {
    %c0_i32 = arith.constant 0 : i32
    %c0_i32_0 = arith.constant 0 : i32
    %c0_i32_1 = arith.constant 0 : i32
    return %c0_i32, %c0_i32_0 : i32, i32
  }
  func.func @transform_5(%arg0: i32) -> (i32, i32) {
    %c0_i32 = arith.constant 0 : i32
    %c0_i32_0 = arith.constant 0 : i32
    return %arg0, %c0_i32 : i32, i32
  }
}

</mosaic_0001>

<bundles_post_ra>
// kernel: tpu_custom_call.1
= control target key start
LH: loop header
LB: loop body
LE: loop exit
PB: predicated region body
PF: predicated region fallthrough
CT: control target
= control target key end

     0   :  { %10 = vsyncpa [#allocation3], 0  ;;  %s828_s0 = inlined_call_operand.vmem [shape: bf16[16,32], index: 0, kind: input, shape index: {}]   ;;  %s829_s1 = inlined_call_operand.vmem [shape: bf16[32,128], index: 1, kind: input, shape index: {}]   ;;  %s830_s2 = inlined_call_operand.vmem [shape: f32[1,128], index: 2, kind: input, shape index: {}]   ;;  %s831_s3 = inlined_call_operand.vmem [shape: bf16[128,32], index: 3, kind: input, shape index: {}]   ;;  %s832_s4 = inlined_call_operand.vmem [shape: f32[1,32], index: 4, kind: input, shape index: {}]   ;;  %s833_s5 = inlined_call_operand.hbm [shape: bf16[16,32], index: 5, kind: output, shape index: {}]  }
   0x1   :  { %12 = vsyncpa [#allocation3 + $0x1], 0  ;;  %s693_s18 = smov 0   ;;  %s695_s19 = smov 0  }
   0x2   :  { %s697_s20 = smov 0   ;;  %s699_s21 = smov 0  }
   0x3 LB: > { %s714_s22 = sadd.s32 4294967295, %s658_s21   ;;  %s482_s23 = sadd.s32 4294967294, %s658_s21   ;;  %s658_s21 = sphi %s699_s21, %s839_s21   ;;  %s654_s20 = sphi %s697_s20, %s838_s20   ;;  %s650_s19 = sphi %s695_s19, %s837_s19   ;;  %s646_s18 = sphi %s693_s18, %s836_s18  }
   0x4   : > { %s718_s24 = sadd.s32 1, %s658_s21   ;;  %s135_s25 = sadd.s32 1, %s654_s20 }
   0x5   : > { %s132_s26 = ssub.s32 %s658_s21, %s718_s24  ;;  %p145_p0 = scmp.ne.s32.totalorder %s654_s20, %s650_s19 }
   0x6   : > { %p133_p1 = scmp.eq.s32.totalorder %s132_s26, 0  ;;  %p146_p2 = scmp.eq.s32.totalorder %s714_s22, 1 }
   0x7   : > { %p151_p3 = scmp.ne.s32.totalorder %s650_s19, %s646_s18  ;;  %p152_p4 = scmp.eq.s32.totalorder %s482_s23, 1 }
   0x8   : > { %s729_s27 = scalar_select %p133_p1, %s654_s20, %s135_s25  }
   0x9   : > { %p731_p5 = por %p146_p2, %p145_p0  ;;  %p735_p6 = por %p152_p4, %p151_p3 }
   0xa   : > { %p485_p7 = scmp.ge.s32.totalorder %s658_s21, 1  ;;  %p189_p8 = scmp.lt.s32.totalorder %s658_s21, 3 }
   0xc   : > { %p190_p9 = pnand %p485_p7, %p189_p8 }
   0xd   : > { %p216_p10 = scmp.lt.s32.totalorder (!%p190_p9), %s714_s22, 1  ;;  %s213_s16 = sand.u32 (!%p190_p9), 1, %s650_s19  }
   0xe   : > { %193 = sbr.rel (%p190_p9) target bundleno = 456 (0x1c8), region = 40  ;;  %s502_s26 = sshll.u32 (!%p190_p9), %s714_s22, 6 }
   0xf   : > { %s787_s9 = scalar_lea.hbm (!%p190_p9), %s833_s5, %s502_s26 }
  0x13   : > { %v586_v0 = vld [vmem:[%s829_s1 + $0x8] sm:$0xff]   ;;  %v660_v1 = vmov 0.0   ;;  %v587_v2 = vld [vmem:[%s829_s1] sm:$0xff]   ;;  %vm661_vm0 = vmmov 0   ;;  %v588_v3 = vld [vmem:[%s831_s3 + $0x38] sm:$0xff]   ;;  %s217_s11 = scalar_select %p216_p10, %s714_s22, 1 }
  0x14   : > { %517 = vmatprep.subr.bf16.mxu0 %v660_v1  ;;  %525 = vmatprep.subr.bf16.mxu1 %v660_v1  ;;  %v589_v4 = vld [vmem:[%s831_s3 + $0x30] sm:$0xff]   ;;  %vm245_vm1 = vcmask 261120   ;;  %v590_v6 = vld [vmem:[%s831_s3 + $0x28] sm:$0xff]   ;;  %v591_v7 = vld [vmem:[%s831_s3 + $0x20] sm:$0xff]   ;;  %vm407_vm2 = vcmask 257024   ;;  %s410_s22 = scalar_lea.sflag [#allocation3], %s213_s16 }
  0x15   : > { %518 = vmatpush3.bf16.msra.mxu0 %v586_v0  ;;  %521 = vmatprep.mubr.msk.bf16.mxu0 %vm661_vm0, %v660_v1  ;;  %s487_s14 = sshll.u32 %s217_s11, 2  ;;  %v592_v8 = vld [vmem:[%s831_s3 + $0x18] sm:$0xff]   ;;  %v593_v9 = vld [vmem:[%s831_s3 + $0x10] sm:$0xff]   ;;  %v594_v10 = vld [vmem:[%s831_s3 + $0x8] sm:$0xff]   ;;  %s662_s11 = smov [#allocation2]  }
  0x16   : > { %519 = vmatprep.subr.bf16.mxu0 %v660_v1  ;;  %541 = vmatprep.mubr.msk.bf16.mxu1 %vm661_vm0, %v660_v1  ;;  %s219_s17 = scalar_lea.vmem %s828_s0, %s487_s14  ;;  %v595_v11 = vld [vmem:[%s831_s3] sm:$0xff]   ;;  %s602_s12 = sshll.u32 %s662_s11, 4  ;;  %s603_s12 = int_to_ptr.vmem [resolvable:$false] %s602_s12 }
  0x17   : > { %526 = vmatpush3.bf16.msra.mxu1 %v588_v3  ;;  %v221_v5 = vld [vmem:[%s219_s17] sm:$0xf]  ;;  %s486_s17 = sshll.u32 %s213_s16, 2  ;;  %s604_s13 = scalar_lea.vmem %s603_s12, 128 }
  0x18   : > { %527 = vmatprep.subr.bf16.mxu1 %v660_v1  ;;  %v488_v12 = vld [vmem:[%s830_s2] ss:$0 sm:$0xff]  ;;  %s215_s30 = scalar_lea.vmem [#allocation2], %s486_s17 }
  0x19   : > { %520 = vmatpush3.bf16.msra.mxu0 %v587_v2  ;;  %v492_v24 = vld [vmem:[%s832_s4] ss:$0 sm:$0xff]  ;;  %s423_s6 = sshll.u32 %s215_s30, 4  ;;  %s789_s6 = int_to_ptr.vmem [resolvable:$true] %s423_s6 }
  0x1a   : > { %s598_s10 = scalar_lea.vmem %s789_s6, 64  ;;  %p605_p0 = scmp.lt.s32.totalorder %s789_s6, %s603_s12 }
  0x1b   : > { %528 = vmatpush3.bf16.msra.mxu1 %v589_v4  ;;  %p599_p11 = scmp.ne.s32.totalorder %s789_s6, %s598_s10  ;;  %p606_p1 = scmp.lt.s32.totalorder %s604_s13, %s598_s10 }
  0x1c   : > { %522 = vmatmul.mubr.msk.bf16.vlgmr.msra.gmra.mxu0 %vm245_vm1, %v221_v5  ;;  %529 = vmatprep.subr.bf16.mxu1 %v660_v1 }
  0x1d   : > { %p600_p12 = pnand %p599_p11, %p731_p5  ;;  %p607_p2 = por %p606_p1, %p605_p0 }
  0x1f   : > { %530 = vmatpush3.bf16.msra.mxu1 %v590_v6  ;;  %p601_p13 = pneg %p600_p12 }
  0x20   : > { %531 = vmatprep.subr.bf16.mxu1 %v660_v1 }
  0x21   : > { %p608_p3 = pnand %p607_p2, %p601_p13 }
  0x23   : > { %532 = vmatpush3.bf16.msra.mxu1 %v591_v7 }
  0x24   : > { %533 = vmatprep.subr.bf16.mxu1 %v660_v1 }
  0x27   : > { %534 = vmatpush3.bf16.msra.mxu1 %v592_v8 }
  0x28   : > { %535 = vmatprep.subr.bf16.mxu1 %v660_v1 }
  0x2b   : > { %536 = vmatpush3.bf16.msra.mxu1 %v593_v9 }
  0x2c   : > { %537 = vmatprep.subr.bf16.mxu1 %v660_v1 }
  0x2f   : > { %538 = vmatpush3.bf16.msra.mxu1 %v594_v10 }
  0x30   : > { %539 = vmatprep.subr.bf16.mxu1 %v660_v1 }
  0x33   : > { %540 = vmatpush3.bf16.msra.mxu1 %v595_v11 }
  0xdc   : > { %v283_v13 = vpop.f32.mrf.mxu0 }
  0xdd   : > { %v284_v14 = vadd.f32 %v488_v12, %v283_v13 }
  0xde   : > { %v523_v15 = vpop.f32.mrf.mxu0 }
  0xdf   : > { %v290_v16 = vmul.f32 0.70710677, %v284_v14  ;;  %v289_v20 = vmul.f32 0.5, %v284_v14 }
  0xe0   : > { %v286_v17 = vpop.f32.mrf.mxu0 }
  0xe1   : > { %596 = verf.f32 %v290_v16 }
  0xe2   : > { %v524_v18 = vpop.f32.mrf.mxu0 }
  0xee   : > { %v597_v19 = vpop.eup %596 }
  0xef   : > { %v292_v21 = vadd.f32 1.0, %v597_v19 }
  0xf1   : > { %v293_v22 = vmul.f32 %v292_v21, %v289_v20 }
  0xf3   : > { %v294_v23 = vpack.c.bf16 %v293_v22, %v293_v22 }
  0xf5   : > { %542 = vmatmul.mubr.bf16.vlgmr.msra.gmra.mxu1 %v294_v23 }
 0x1b5   : > { %v400_v25 = vpop.f32.mrf.mxu1 }
 0x1b6   : > { %v401_v26 = vadd.f32 %v492_v24, %v400_v25 }
 0x1b7   : > { %v543_v27 = vpop.f32.mrf.mxu1 }
 0x1b8   : > { %v406_v28 = vpack.c.bf16 %v401_v26, %v401_v26 }
 0x1b9   : > { %v403_v29 = vpop.f32.mrf.mxu1 }
 0x1ba   : > { %408 = vst.msk [vmem:[%s215_s30] sm:$0xf] %vm407_vm2, %v406_v28 }
 0x1bb   : > { %v544_v30 = vpop.f32.mrf.mxu1 }
 0x1bc   : > { %611 = shalt.err (!%p608_p3)
}
 0x1bd   : > { %s612_s14 = scalar_lea.hbm %s787_s9, 64  ;;  %s616_s17 = scalar_lea.hbm %s833_s5, 128 }
 0x1be   : > { %p613_p4 = scmp.ne.s32.totalorder %s787_s9, %s612_s14  ;;  %p617_p9 = scmp.lt.s32.totalorder %s787_s9, %s833_s5 }
 0x1bf   : > { %p618_p10 = scmp.lt.s32.totalorder %s616_s17, %s612_s14 }
 0x1c0   : > { %p614_p7 = pnand %p613_p4, %p731_p5 }
 0x1c1   : > { %p619_p11 = por %p618_p10, %p617_p9 }
 0x1c2   : > { %p615_p8 = pneg %p614_p7 }
 0x1c4   : > { %p620_p12 = pnand %p619_p11, %p615_p8 }
 0x1c6   : > { %623 = shalt.err (!%p620_p12)
}
 0x1c7   : > { %545 = dma.vmem_to_hbm [thread:$0]  (%p731_p5), %s789_s6, 64, %s787_s9, %s410_s22  }
 0x1c8 PF: > { %p551_p13 = scmp.ge.s32.totalorder %s658_s21, 2  ;;  %s435_s26 = sand.u32 1, %s646_s18  }
 0x1c9   : > { %s436_s30 = scalar_lea.sflag [#allocation3], %s435_s26 }
 0x1ca   : > { %p548_p0 = pnand %p551_p13, %p735_p6 }
 0x1cc   : > { %p549_p1 = pneg %p548_p0 }
 0x1ce   : > { %641 = dma.done.wait (%p549_p1), %s436_s30, 64  }
 0x1cf   : > { %643 = vsyncadd (%p549_p1), %s436_s30, 4294967232  ;;  %p15_p2 = scmp.ge.s32.totalorder %s718_s24, 4   ;;  %s836_s18 = smov %s650_s19 }
 0x1d0   : > { %s837_s19 = smov %s654_s20  ;;  %s838_s20 = smov %s729_s27 }
 0x1d1   : > { %s839_s21 = smov %s718_s24  ;;  %17 = sbr.rel (!%p15_p2) target bundleno = 3 (0x3), region = 75 }
 0x1d6   :  { %441 = vsyncpa [#allocation3], 1 }
 0x1d7   :  { %443 = vsyncpa [#allocation3 + $0x1], 1 }

</bundles_post_ra>
